<compile_context>
chip_gen: v5e
topology: v5e:2x2
jax: 0.10.0
libtpu: 0.0.40
codegen_flags: <defaults>
</compile_context>

<pallas_src>
import jax
import jax.numpy as jnp
from jax.experimental import pallas as pl
from jax.experimental.pallas import tpu as pltpu

LANES = 128
_DEFAULT_BLOCK_ROWS = 1024          # 1024 x 128 f32 = 512 KiB per block
_MAX_BLOCK_BYTES = 2 * 1024 * 1024  # per-buffer cap (safe for v7x's 64 MiB VMEM)


def _round_up(x, m):
    return (x + m - 1) // m * m


def _make_scale_kernel(n_atom_blocks):
    def kernel(x_ref, inv_ref, o_ref):
        # inv_ref is a tiny resident [2, W] table:
        #   row 0 = atom inverse-temperature lane pattern
        #   row 1 = bond inverse-temperature lane pattern
        # Select the row from the (static-per-trace) atom/bond block split.
        is_atom = pl.program_id(0) < n_atom_blocks
        inv = jnp.where(is_atom, inv_ref[0:1, :], inv_ref[1:2, :])
        o_ref[...] = x_ref[...] * inv
    return kernel


def _slab_width_rows(n, t):
    """Width W and (unpadded) row count of the lane-dense slab for [n, t]."""
    if t <= LANES:
        t_pad = pl.next_power_of_2(t)           # divides 128
        return LANES, pl.cdiv(n * t_pad, LANES)
    return _round_up(t, LANES), n


def _pack(logits, inv_temp, block_rows):
    """Pack [N, T] into a lane-dense [rows, W] slab (rows % block_rows == 0).

    Returns (slab, inv_row [1, W], unpack_fn).
    """
    n, t = logits.shape
    if t <= LANES:
        # Fold rows into the 128-lane axis: pad T to a power of two dividing
        # 128, flatten row-major, reshape to [rows, 128].  The per-lane
        # inverse-temperature pattern is the padded inv_temp tiled 128/t_pad x.
        t_pad = pl.next_power_of_2(t)
        w = LANES
        reps = w // t_pad
        x = logits if t_pad == t else jnp.pad(logits, ((0, 0), (0, t_pad - t)))
        flat = x.reshape(-1)
        total = flat.shape[0]
        rows = _round_up(pl.cdiv(total, w), block_rows)
        flat = jnp.pad(flat, (0, rows * w - total))
        slab = flat.reshape(rows, w)
        inv_pad = jnp.pad(inv_temp, (0, t_pad - t), constant_values=1.0)
        inv_row = jnp.tile(inv_pad, reps).reshape(1, w)

        def unpack(o_slab):
            return o_slab.reshape(-1)[:total].reshape(n, t_pad)[:, :t]

        return slab, inv_row, unpack
    else:
        # Lane axis is already (nearly) dense: keep the 2-D layout, pad T up
        # to a multiple of 128 and N up to a multiple of block_rows.
        w = _round_up(t, LANES)
        rows = _round_up(n, block_rows)
        slab = jnp.pad(logits, ((0, rows - n), (0, w - t)))
        inv_row = jnp.pad(inv_temp, (0, w - t), constant_values=1.0).reshape(1, w)

        def unpack(o_slab):
            return o_slab[:n, :t]

        return slab, inv_row, unpack


def ts_model_forward(atom_logits, bond_logits, atom_temperature, bond_temperature,
                     *, block_rows=_DEFAULT_BLOCK_ROWS):
    """Pallas equivalent of TSModel.forward given the inner model's logits."""
    n_a, t = atom_logits.shape
    n_b, t_b = bond_logits.shape
    assert t == t_b == atom_temperature.shape[0] == bond_temperature.shape[0]
    dtype = atom_logits.dtype

    # Divide -> multiply by reciprocal (computed once, in f32 for accuracy).
    inv_a = (1.0 / atom_temperature.astype(jnp.float32)).astype(dtype)
    inv_b = (1.0 / bond_temperature.astype(jnp.float32)).astype(dtype)

    w, rows_a = _slab_width_rows(n_a, t)
    _, rows_b = _slab_width_rows(n_b, t)

    # Block sizing: as large as the data needs (up to the default), clamped to
    # a per-buffer byte cap so double-buffered in+out stays comfortable even
    # on v7x (64 MiB VMEM).  Always a multiple of 8 (sublane constraint).
    bytes_per_row = w * jnp.dtype(dtype).itemsize
    cap = max(8, (_MAX_BLOCK_BYTES // bytes_per_row) // 8 * 8)
    need = _round_up(max(rows_a, rows_b, 1), 8)
    block_rows_eff = max(8, min(block_rows, cap, need))

    a_slab, inv_row_a, unpack_a = _pack(atom_logits, inv_a, block_rows_eff)
    b_slab, inv_row_b, unpack_b = _pack(bond_logits, inv_b, block_rows_eff)

    slab = jnp.concatenate([a_slab, b_slab], axis=0)
    inv_tbl = jnp.concatenate([inv_row_a, inv_row_b], axis=0)   # [2, W]

    n_atom_blocks = a_slab.shape[0] // block_rows_eff
    total_blocks = slab.shape[0] // block_rows_eff

    out_slab = pl.pallas_call(
        _make_scale_kernel(n_atom_blocks),
        out_shape=jax.ShapeDtypeStruct(slab.shape, slab.dtype),
        grid_spec=pltpu.PrefetchScalarGridSpec(
            num_scalar_prefetch=0,
            grid=(total_blocks,),
            in_specs=[
                pl.BlockSpec((block_rows_eff, w), lambda i: (i, 0)),
                # Tiny inverse-temperature table: index_map is constant, so the
                # block stays resident across the whole grid.
                pl.BlockSpec((2, w), lambda i: (0, 0)),
            ],
            out_specs=pl.BlockSpec((block_rows_eff, w), lambda i: (i, 0)),
        ),
        compiler_params=pltpu.CompilerParams(
            dimension_semantics=("parallel",),
        ),
    )(slab, inv_tbl)

    atom_scaled = unpack_a(out_slab[:a_slab.shape[0]])
    bond_scaled = unpack_b(out_slab[a_slab.shape[0]:])
    return atom_scaled, bond_scaled


if __name__ == "__main__":
    n_task = 8
    n_atoms = 53    # deliberately NOT a multiple of any tile size (ragged)
    n_bonds = 118

    key = jax.random.PRNGKey(0)
    k_atom, k_bond, k_ta, k_tb = jax.random.split(key, 4)

    # Synthetic "inner model" outputs (the wrapped GROVER model is opaque).
    atom_logits = jax.random.normal(k_atom, (n_atoms, n_task), dtype=jnp.float32)
    bond_logits = jax.random.normal(k_bond, (n_bonds, n_task), dtype=jnp.float32)

    # nn.Parameter(torch.ones(n_task)) at init; use non-trivial values here so
    # the check actually exercises the broadcast / lane-repacking layout.
    atom_temperature = jax.random.uniform(k_ta, (n_task,), jnp.float32, 0.5, 2.0)
    bond_temperature = jax.random.uniform(k_tb, (n_task,), jnp.float32, 0.5, 2.0)

    atom_scaled, bond_scaled = ts_model_forward(
        atom_logits, bond_logits, atom_temperature, bond_temperature
    )
    jax.block_until_ready((atom_scaled, bond_scaled))

    # Reference check (pure JAX, true division).
    ref_atom = atom_logits / atom_temperature[None, :]
    ref_bond = bond_logits / bond_temperature[None, :]
    assert atom_scaled.shape == atom_logits.shape
    assert bond_scaled.shape == bond_logits.shape
    assert jnp.allclose(atom_scaled, ref_atom, rtol=1e-5, atol=1e-6)
    assert jnp.allclose(bond_scaled, ref_bond, rtol=1e-5, atol=1e-6)

    print("KERNEL_OK")
</pallas_src>

<mosaic_0001>
module attributes {stable_mosaic.version = 11 : i64} {
  func.func @kernel(%arg0: i32, %arg1: memref<8x128xf32, #tpu.memory_space<vmem>>, %arg2: memref<2x128xf32, #tpu.memory_space<vmem>>, %arg3: memref<8x128xf32, #tpu.memory_space<vmem>>) attributes {dimension_semantics = [#tpu.dimension_semantics<parallel>], iteration_bounds = array<i64: 2>, scalar_prefetch = 0 : i64, scratch_operands = 0 : i64, tpu.core_type = #tpu.core_type<tc>, window_params = [{transform_indices = @transform_0, window_bounds = array<i64: 8, 128>}, {pipeline_mode = #tpu.pipeline_mode<synchronous>, transform_indices = @transform_1, window_bounds = array<i64: 2, 128>}, {transform_indices = @transform_2, window_bounds = array<i64: 8, 128>}]} {
    %c1_i32 = arith.constant 1 : i32
    %0 = arith.cmpi slt, %arg0, %c1_i32 : i32
    %c0 = arith.constant 0 : index
    %c0_0 = arith.constant 0 : index
    %1 = vector.load %arg2[%c0, %c0_0] : memref<2x128xf32, #tpu.memory_space<vmem>>, vector<1x128xf32>
    %c1 = arith.constant 1 : index
    %c0_1 = arith.constant 0 : index
    %2 = vector.load %arg2[%c1, %c0_1] : memref<2x128xf32, #tpu.memory_space<vmem>>, vector<1x128xf32>
    %3 = arith.select %0, %1, %2 : vector<1x128xf32>
    %c0_2 = arith.constant 0 : index
    %c0_3 = arith.constant 0 : index
    %4 = vector.load %arg1[%c0_2, %c0_3] : memref<8x128xf32, #tpu.memory_space<vmem>>, vector<8x128xf32>
    %5 = vector.broadcast %3 : vector<1x128xf32> to vector<8x128xf32>
    %6 = arith.mulf %4, %5 : vector<8x128xf32>
    %c0_4 = arith.constant 0 : index
    %c0_5 = arith.constant 0 : index
    %7 = vector.load %arg3[%c0_4, %c0_5] : memref<8x128xf32, #tpu.memory_space<vmem>>, vector<8x128xf32>
    tpu.vector_store %arg3[%c0_4, %c0_5], %6 {strides = array<i32>} : memref<8x128xf32, #tpu.memory_space<vmem>>, vector<8x128xf32>,
    return
  }
  func.func @transform_0(%arg0: i32) -> (i32, i32) {
    %c0_i32 = arith.constant 0 : i32
    %c0_i32_0 = arith.constant 0 : i32
    return %arg0, %c0_i32 : i32, i32
  }
  func.func @transform_1(%arg0: i32) -> (i32, i32) {
    %c0_i32 = arith.constant 0 : i32
    %c0_i32_0 = arith.constant 0 : i32
    %c0_i32_1 = arith.constant 0 : i32
    return %c0_i32, %c0_i32_0 : i32, i32
  }
  func.func @transform_2(%arg0: i32) -> (i32, i32) {
    %c0_i32 = arith.constant 0 : i32
    %c0_i32_0 = arith.constant 0 : i32
    return %arg0, %c0_i32 : i32, i32
  }
}

</mosaic_0001>

<bundles_post_ra>
// kernel: tpu_custom_call.1
= control target key start
LH: loop header
LB: loop body
LE: loop exit
PB: predicated region body
PF: predicated region fallthrough
CT: control target
= control target key end

     0   :  { %7 = vsyncpa [#allocation3], 0  ;;  %s641_s0 = inlined_call_operand.hbm [shape: f32[16,128], index: 0, kind: input, shape index: {}]   ;;  %s642_s1 = inlined_call_operand.hbm [shape: f32[2,128], index: 1, kind: input, shape index: {}]   ;;  %s643_s2 = inlined_call_operand.hbm [shape: f32[16,128], index: 2, kind: output, shape index: {}]  }
   0x1   :  { %9 = vsyncpa [#allocation3 + $0x1], 0 }
   0x2   :  { %10 = vsyncpa [#allocation6], 0 }
   0x3   :  { %11 = vsyncpa [#allocation4], 0 }
   0x4   :  { %13 = vsyncpa [#allocation4 + $0x1], 0  ;;  %s502_s9 = smov 0   ;;  %s504_s10 = smov 0  }
   0x5   :  { %s506_s11 = smov 0   ;;  %s508_s12 = smov 0  }
   0x6 LB: > { %s523_s13 = sadd.s32 4294967295, %s484_s12   ;;  %s283_s14 = sadd.s32 4294967294, %s484_s12   ;;  %s484_s12 = sphi %s508_s12, %s653_s12   ;;  %s480_s11 = sphi %s506_s11, %s652_s11   ;;  %s476_s10 = sphi %s504_s10, %s651_s10   ;;  %s472_s9 = sphi %s502_s9, %s650_s9  }
   0x7   : > { %p39_p0 = scmp.ne.s32.totalorder %s476_s10, %s472_s9  ;;  %p40_p1 = scmp.eq.s32.totalorder %s523_s13, 0 }
   0x8   : > { %p84_p2 = scmp.eq.s32.totalorder %s523_s13, 1  ;;  %p90_p3 = scmp.eq.s32.totalorder %s283_s14, 1 }
   0x9   : > { %p532_p4 = por %p40_p1, %p39_p0  ;;  %p284_p5 = scmp.ge.s32.totalorder %s484_s12, 1 }
   0xa   : > { %p537_p6 = por %p90_p3, %p39_p0  ;;  %p97_p7 = scmp.lt.s32.totalorder %s484_s12, 3 }
   0xb   : > { %s109_s19 = sshll.u32 %s642_s1, 4  ;;  %s486_s21 = smov [#allocation5]   ;;  %s110_s19 = int_to_ptr.hbm [resolvable:$true] %s109_s19 }
   0xc   : > { %p545_p8 = pnand %p284_p5, %p97_p7  ;;  %s111_s22 = sshll.u32 %s486_s21, 4  ;;  %s112_s22 = int_to_ptr.vmem [resolvable:$true] %s111_s22 }
   0xd   : > { %s555_s23 = sadd.s32 1, %s484_s12   ;;  %s26_s24 = sadd.s32 1, %s480_s11 }
   0xe   : > { %p305_p10 = pneg %p545_p8  ;;  %s23_s25 = ssub.s32 %s484_s12, %s555_s23 }
   0xf   : > { %p24_p12 = scmp.eq.s32.totalorder %s23_s25, 0  ;;  %p33_p13 = scmp.ne.s32.totalorder %s480_s11, %s476_s10 }
  0x10   : > { %p306_p11 = pnand %p305_p10, %p40_p1  ;;  %p34_p0 = scmp.eq.s32.totalorder %s484_s12, 0 }
  0x11   : > { %s564_s26 = scalar_select %p24_p12, %s480_s11, %s26_s24  }
  0x12   : > { %308 = dma.hbm_to_vmem [thread:$0]  (!%p306_p11), %s110_s19, 32, %s112_s22, [#allocation6]  }
  0x13   : > { %p568_p3 = por %p84_p2, %p33_p13  ;;  %p318_p5 = scmp.lt.s32.totalorder %s484_s12, 2 }
  0x14   : > { %s122_s28 = sand.u32 1, %s480_s11   ;;  %s288_s29 = sshll.u32 %s484_s12, 3 }
  0x15   : > { %p35_p7 = por %p34_p0, %p33_p13  ;;  %s287_s30 = sshll.u32 %s122_s28, 3 }
  0x16   : > { %s130_s5 = scalar_lea.hbm %s641_s0, %s288_s29  ;;  %s126_s7 = scalar_lea.vmem [#allocation2], %s287_s30 }
  0x17   : > { %s132_s6 = sshll.u32 %s130_s5, 4  ;;  %s134_s8 = sshll.u32 %s126_s7, 4  ;;  %s133_s6 = int_to_ptr.hbm [resolvable:$true] %s132_s6  ;;  %s135_s8 = int_to_ptr.vmem [resolvable:$true] %s134_s8 }
  0x18   : > { %p578_p10 = pnand %p318_p5, %p35_p7  ;;  %s123_s17 = scalar_lea.sflag [#allocation3], %s122_s28 }
  0x19   : > { %s384_s18 = sshra.s32 %s133_s6, 4  ;;  %s391_s24 = scalar_lea.hbm %s641_s0, 16  ;;  %s385_s18 = int_to_ptr.hbm [resolvable:$true] %s384_s18 }
  0x1a   : > { %s386_s19 = scalar_lea.hbm %s385_s18, 8  ;;  %p388_p11 = pneg %p578_p10 }
  0x1b   : > { %p387_p2 = scmp.ne.s32.totalorder %s385_s18, %s386_s19  ;;  %p392_p0 = scmp.lt.s32.totalorder %s385_s18, %s641_s0 }
  0x1c   : > { %p393_p5 = scmp.lt.s32.totalorder %s391_s24, %s386_s19 }
  0x1d   : > { %p389_p12 = pnand %p388_p11, %p387_p2 }
  0x1e   : > { %p394_p7 = por %p393_p5, %p392_p0 }
  0x1f   : > { %p390_p13 = pneg %p389_p12 }
  0x21   : > { %p395_p9 = pnand %p394_p7, %p390_p13 }
  0x23   : > { %398 = shalt.err (!%p395_p9)
}
  0x24   : > { %312 = dma.hbm_to_vmem [thread:$0]  (!%p578_p10), %s133_s6, 128, %s135_s8, %s123_s17  }
  0x25   : > { %143 = sbr.rel (%p545_p8) target bundleno = 61 (0x3d), region = 28  ;;  %s595_s28 = sand.u32 (!%p545_p8), 1, %s476_s10  }
  0x26   : > { %s290_s30 = sshll.u32 (!%p545_p8), %s595_s28, 3  ;;  %s146_s3 = scalar_lea.sflag (!%p545_p8), [#allocation3], %s595_s28 }
  0x27   : > { %s149_s4 = scalar_lea.vmem (!%p545_p8), [#allocation2], %s290_s30 }
  0x2a   : > { %459 = dma.done.wait (%p532_p4), %s146_s3, 128  }
  0x2b   : > { %461 = vsyncadd (%p532_p4), %s146_s3, 4294967168 }
  0x2c   : > { %463 = dma.done.wait (%p40_p1), [#allocation6], 32  }
  0x2d   : > { %465 = vsyncadd (%p40_p1), [#allocation6], 4294967264  ;;  %p176_p8 = scmp.lt.s32.totalorder %s523_s13, 1  ;;  %s294_s5 = sshll.u32 %s523_s13, 3  ;;  %v177_v1 = vld [vmem:[#allocation5] sm:$0x1] }
  0x2e   : > { %s198_s8 = scalar_lea.hbm %s643_s2, %s294_s5  ;;  %v178_v2 = vld [vmem:[#allocation5 + $0x1] sm:$0x1]  ;;  %v183_v4 = vld [vmem:[%s149_s4] sm:$0xff]  ;;  %s175_s15 = scalar_lea.vmem [#allocation7], %s290_s30 }
  0x2f   : > { %s179_s20 = scalar_select %p176_p8, 1, 0 }
  0x30   : > { %s200_s14 = sshll.u32 %s175_s15, 4  ;;  %s202_s17 = sshll.u32 %s198_s8, 4  ;;  %s201_s14 = int_to_ptr.vmem [resolvable:$true] %s200_s14  ;;  %s203_s17 = int_to_ptr.hbm [resolvable:$true] %s202_s17 }
  0x31   : > { %v180_v0 = vstv %s179_s20  ;;  %s188_s13 = scalar_lea.sflag [#allocation4], %s595_s28  ;;  %s428_s18 = sshra.s32 %s203_s17, 4  ;;  %s429_s18 = int_to_ptr.hbm [resolvable:$true] %s428_s18 }
  0x32   : > { %vm181_vm0 = vcmp.eq.s32.totalorder %v180_v0, 1  ;;  %s430_s19 = scalar_lea.hbm %s429_s18, 8  ;;  %s434_s24 = scalar_lea.hbm %s643_s2, 16 }
  0x33   : > { %v182_v3 = vsel %vm181_vm0, %v177_v1, %v178_v2  ;;  %p431_p1 = scmp.ne.s32.totalorder %s429_s18, %s430_s19  ;;  %p435_p10 = scmp.lt.s32.totalorder %s429_s18, %s643_s2 }
  0x34   : > { %v184_v5 = vperm.slane %v182_v3, 0  ;;  %p436_p2 = scmp.lt.s32.totalorder %s434_s24, %s430_s19 }
  0x35   : > { %p432_p4 = pnand %p431_p1, %p568_p3 }
  0x36   : > { %v185_v6 = vmul.f32 %v184_v5, %v183_v4  ;;  %p437_p11 = por %p436_p2, %p435_p10 }
  0x37   : > { %p433_p9 = pneg %p432_p4 }
  0x38   : > { %186 = vst [vmem:[%s175_s15] sm:$0xff] %v185_v6 }
  0x39   : > { %p438_p12 = pnand %p437_p11, %p433_p9 }
  0x3b   : > { %441 = shalt.err (!%p438_p12)
}
  0x3c   : > { %303 = dma.vmem_to_hbm [thread:$0]  (%p568_p3), %s201_s14, 128, %s203_s17, %s188_s13  }
  0x3d PF: > { %s214_s28 = sand.u32 1, %s472_s9   ;;  %p649_p13 = scmp.ge.s32.totalorder %s484_s12, 2 }
  0x3e   : > { %s215_s30 = scalar_lea.sflag [#allocation4], %s214_s28 }
  0x3f   : > { %p314_p0 = pnand %p649_p13, %p537_p6 }
  0x41   : > { %p315_p5 = pneg %p314_p0 }
  0x43   : > { %467 = dma.done.wait (%p315_p5), %s215_s30, 128  }
  0x44   : > { %469 = vsyncadd (%p315_p5), %s215_s30, 4294967168  ;;  %p16_p7 = scmp.ge.s32.totalorder %s555_s23, 4   ;;  %s650_s9 = smov %s476_s10 }
  0x45   : > { %s651_s10 = smov %s480_s11  ;;  %s652_s11 = smov %s564_s26 }
  0x46   : > { %s653_s12 = smov %s555_s23  ;;  %18 = sbr.rel (!%p16_p7) target bundleno = 6 (0x6), region = 77 }
  0x4b   :  { %221 = vsyncpa [#allocation3], 1 }
  0x4c   :  { %223 = vsyncpa [#allocation3 + $0x1], 1 }
  0x4d   :  { %224 = vsyncpa [#allocation6], 1 }
  0x4e   :  { %225 = vsyncpa [#allocation4], 1 }
  0x4f   :  { %227 = vsyncpa [#allocation4 + $0x1], 1 }

</bundles_post_ra>
